<compile_context>
chip_gen: v7x
topology: tpu7x:2x2x1
jax: 0.10.0
libtpu: 0.0.40
codegen_flags: <defaults>
</compile_context>

<pallas_src>
import functools

import jax
import jax.numpy as jnp
from jax.experimental import pallas as pl
from jax.experimental.pallas import tpu as pltpu


def _autoencoder_kernel(
    x_ref,
    w1_ref, b1_ref,
    w2_ref, b2_ref,
    w3_ref, b3_ref,
    w4_ref, b4_ref,
    w5_ref, b5_ref,
    w6_ref, b6_ref,
    out_ref,
):
    """Fused 6-layer MLP on one (rows, lanes) tile of packed activations."""

    def dense(h, w_ref, b_ref):
        # bf16 (or f32) matmul operands, f32 MXU accumulation, f32 bias add.
        return (
            jnp.dot(h.astype(w_ref.dtype), w_ref[...],
                    preferred_element_type=jnp.float32)
            + b_ref[...]
        )

    x = x_ref[...]

    # ---- encoder ----
    h = jnp.maximum(dense(x, w1_ref, b1_ref), 0.0)   # ReLU
    h = jnp.maximum(dense(h, w2_ref, b2_ref), 0.0)   # ReLU
    z = jnp.tanh(dense(h, w3_ref, b3_ref))           # Tanh

    # ---- decoder ----
    d = jnp.maximum(dense(z, w4_ref, b4_ref), 0.0)   # ReLU
    d = jnp.maximum(dense(d, w5_ref, b5_ref), 0.0)   # ReLU
    y = dense(d, w6_ref, b6_ref)

    out_ref[...] = (y * 10.0).astype(out_ref.dtype)


def _block_diag(w, p):
    """Block-diagonal tiling of w (p copies) for the row-packing trick."""
    if p == 1:
        return w
    fi, fo = w.shape
    out = jnp.zeros((fi * p, fo * p), w.dtype)
    for j in range(p):
        out = out.at[j * fi:(j + 1) * fi, j * fo:(j + 1) * fo].set(w)
    return out


@functools.partial(jax.jit, static_argnames=("block_rows", "compute_dtype"))
def autoencoder_forward(x, params, block_rows=1024, compute_dtype=jnp.bfloat16):
    """x: (B, input_dim) float32.  params: dict of (in,out) weights / (1,out) biases."""
    B, input_dim = x.shape
    out_dtype = x.dtype

    # Lane-dense row packing factor.
    if input_dim <= 128 and 128 % input_dim == 0:
        P = 128 // input_dim
    else:
        P = 1  # fallback: still correct, just lane-masked I/O
    lanes = input_dim * P

    pad = (-B) % P
    if pad:
        x = jnp.concatenate([x, jnp.zeros((pad, input_dim), x.dtype)], axis=0)
    rows = (B + pad) // P
    x_packed = x.reshape(rows, lanes).astype(compute_dtype)

    # Block-diagonal packed weights (compute_dtype) + lane-tiled f32 biases.
    weight_args = []
    for l in range(1, 7):
        w = _block_diag(params[f"w{l}"], P).astype(compute_dtype)
        b = jnp.tile(params[f"b{l}"], (1, P)).astype(jnp.float32)
        weight_args += [w, b]

    # Batch-tile choice: large tiles amortize per-step overhead; keep >= 2
    # grid steps when possible so the "parallel" axis can use both v7x TCs.
    nb_target = 2 if rows >= 16 else 1
    block = min(block_rows, max(8, -(-rows // nb_target)))
    if block < rows:
        block = ((block + 7) // 8) * 8   # (8,128) sublane rule for tiled axis
    block = min(block, rows)             # == rows -> full-extent block (always legal)
    nb = pl.cdiv(rows, block)

    in_specs = [pl.BlockSpec((block, lanes), lambda i: (i, 0))]
    for a in weight_args:
        in_specs.append(pl.BlockSpec(a.shape, lambda i: (0, 0)))
    out_spec = pl.BlockSpec((block, lanes), lambda i: (i, 0))

    y_packed = pl.pallas_call(
        _autoencoder_kernel,
        out_shape=jax.ShapeDtypeStruct((rows, lanes), out_dtype),
        grid_spec=pltpu.PrefetchScalarGridSpec(
            num_scalar_prefetch=0,
            grid=(nb,),
            in_specs=in_specs,
            out_specs=out_spec,
        ),
        compiler_params=pltpu.CompilerParams(
            dimension_semantics=("parallel",),
            vmem_limit_bytes=32 * 1024 * 1024,
        ),
    )(x_packed, *weight_args)

    y = y_packed.reshape(B + pad, input_dim)
    return y[:B] if pad else y


def init_params(key, input_dim, latent_dim=50):
    """Deterministic init. Weights stored as (in_features, out_features)."""
    dims = [
        (input_dim, 16),   # encoder L1
        (16, 8),           # encoder L2
        (8, latent_dim),   # encoder L3
        (latent_dim, 8),   # decoder L1
        (8, 16),           # decoder L2
        (16, input_dim),   # decoder L3
    ]
    params = {}
    keys = jax.random.split(key, 2 * len(dims))
    for idx, (fan_in, fan_out) in enumerate(dims):
        bound = 1.0 / jnp.sqrt(fan_in)  # PyTorch Linear default U(-1/sqrt(in), 1/sqrt(in))
        w = jax.random.uniform(
            keys[2 * idx], (fan_in, fan_out), jnp.float32, -bound, bound)
        b = jax.random.uniform(
            keys[2 * idx + 1], (1, fan_out), jnp.float32, -bound, bound)
        params[f"w{idx + 1}"] = w
        params[f"b{idx + 1}"] = b
    return params


def reference_forward(x, params, compute_dtype=jnp.bfloat16):
    """Pure-JAX reference with the same bf16-operand / f32-accumulate recipe."""
    def dense(h, w, b):
        return jnp.dot(h.astype(compute_dtype), w.astype(compute_dtype),
                       preferred_element_type=jnp.float32) + b

    h = jnp.maximum(dense(x, params["w1"], params["b1"]), 0.0)
    h = jnp.maximum(dense(h, params["w2"], params["b2"]), 0.0)
    z = jnp.tanh(dense(h, params["w3"], params["b3"]))
    d = jnp.maximum(dense(z, params["w4"], params["b4"]), 0.0)
    d = jnp.maximum(dense(d, params["w5"], params["b5"]), 0.0)
    y = dense(d, params["w6"], params["b6"])
    return (y * 10.0).astype(x.dtype)


if __name__ == "__main__":
    key = jax.random.PRNGKey(0)
    k_x, k_p = jax.random.split(key)

    batch = 8
    input_dim = 32
    latent_dim = 50

    x = jax.random.normal(k_x, (batch, input_dim), jnp.float32)
    params = init_params(k_p, input_dim, latent_dim)

    out = autoencoder_forward(x, params)
    out = jax.block_until_ready(out)
    ref = reference_forward(x, params)
    assert out.shape == (batch, input_dim)
    assert jnp.allclose(out, ref, atol=1e-2, rtol=1e-2), "mismatch vs reference"

    # Exercise the multi-tile grid path (several packed-row blocks).
    x2 = jax.random.normal(k_x, (256, input_dim), jnp.float32)
    out2 = jax.block_until_ready(autoencoder_forward(x2, params, block_rows=16))
    ref2 = reference_forward(x2, params)
    assert out2.shape == (256, input_dim)
    assert jnp.allclose(out2, ref2, atol=1e-2, rtol=1e-2), "mismatch (tiled) vs reference"

    print("KERNEL_OK")
</pallas_src>

<mosaic_0001>
module attributes {stable_mosaic.version = 11 : i64} {
  func.func @_autoencoder_kernel(%arg0: i32, %arg1: memref<2x128xbf16, #tpu.memory_space<vmem>>, %arg2: memref<128x64xbf16, #tpu.memory_space<vmem>>, %arg3: memref<1x64xf32, #tpu.memory_space<vmem>>, %arg4: memref<64x32xbf16, #tpu.memory_space<vmem>>, %arg5: memref<1x32xf32, #tpu.memory_space<vmem>>, %arg6: memref<32x200xbf16, #tpu.memory_space<vmem>>, %arg7: memref<1x200xf32, #tpu.memory_space<vmem>>, %arg8: memref<200x32xbf16, #tpu.memory_space<vmem>>, %arg9: memref<1x32xf32, #tpu.memory_space<vmem>>, %arg10: memref<32x64xbf16, #tpu.memory_space<vmem>>, %arg11: memref<1x64xf32, #tpu.memory_space<vmem>>, %arg12: memref<64x128xbf16, #tpu.memory_space<vmem>>, %arg13: memref<1x128xf32, #tpu.memory_space<vmem>>, %arg14: memref<2x128xf32, #tpu.memory_space<vmem>>) attributes {dimension_semantics = [#tpu.dimension_semantics<parallel>], iteration_bounds = array<i64: 1>, scalar_prefetch = 0 : i64, scratch_operands = 0 : i64, tpu.core_type = #tpu.core_type<tc>, window_params = [{transform_indices = @transform_0, window_bounds = array<i64: 2, 128>}, {pipeline_mode = #tpu.pipeline_mode<synchronous>, transform_indices = @transform_1, window_bounds = array<i64: 128, 64>}, {pipeline_mode = #tpu.pipeline_mode<synchronous>, transform_indices = @transform_2, window_bounds = array<i64: 1, 64>}, {pipeline_mode = #tpu.pipeline_mode<synchronous>, transform_indices = @transform_3, window_bounds = array<i64: 64, 32>}, {pipeline_mode = #tpu.pipeline_mode<synchronous>, transform_indices = @transform_4, window_bounds = array<i64: 1, 32>}, {pipeline_mode = #tpu.pipeline_mode<synchronous>, transform_indices = @transform_5, window_bounds = array<i64: 32, 200>}, {pipeline_mode = #tpu.pipeline_mode<synchronous>, transform_indices = @transform_6, window_bounds = array<i64: 1, 200>}, {pipeline_mode = #tpu.pipeline_mode<synchronous>, transform_indices = @transform_7, window_bounds = array<i64: 200, 32>}, {pipeline_mode = #tpu.pipeline_mode<synchronous>, transform_indices = @transform_8, window_bounds = array<i64: 1, 32>}, {pipeline_mode = #tpu.pipeline_mode<synchronous>, transform_indices = @transform_9, window_bounds = array<i64: 32, 64>}, {pipeline_mode = #tpu.pipeline_mode<synchronous>, transform_indices = @transform_10, window_bounds = array<i64: 1, 64>}, {pipeline_mode = #tpu.pipeline_mode<synchronous>, transform_indices = @transform_11, window_bounds = array<i64: 64, 128>}, {pipeline_mode = #tpu.pipeline_mode<synchronous>, transform_indices = @transform_12, window_bounds = array<i64: 1, 128>}, {transform_indices = @transform_13, window_bounds = array<i64: 2, 128>}]} {
    %c0 = arith.constant 0 : index
    %c0_0 = arith.constant 0 : index
    %0 = vector.load %arg1[%c0, %c0_0] : memref<2x128xbf16, #tpu.memory_space<vmem>>, vector<2x128xbf16>
    %c0_1 = arith.constant 0 : index
    %c0_2 = arith.constant 0 : index
    %1 = vector.load %arg2[%c0_1, %c0_2] : memref<128x64xbf16, #tpu.memory_space<vmem>>, vector<128x64xbf16>
    %cst = arith.constant dense<0.000000e+00> : vector<2x64xf32>
    %2 = tpu.matmul %0, %1, %cst {dimension_numbers = #tpu.dot_dimension_numbers<[1], [0], [0], [1], [0, 0, 1, 1], [], []>} : vector<2x128xbf16>, vector<128x64xbf16>, vector<2x64xf32> -> vector<2x64xf32>
    %c0_3 = arith.constant 0 : index
    %c0_4 = arith.constant 0 : index
    %3 = vector.load %arg3[%c0_3, %c0_4] : memref<1x64xf32, #tpu.memory_space<vmem>>, vector<1x64xf32>
    %4 = vector.broadcast %3 : vector<1x64xf32> to vector<2x64xf32>
    %5 = arith.addf %2, %4 : vector<2x64xf32>
    %cst_5 = arith.constant 0.000000e+00 : f32
    %6 = vector.broadcast %cst_5 : f32 to vector<2x64xf32>
    %7 = arith.maximumf %5, %6 : vector<2x64xf32>
    %8 = arith.truncf %7 : vector<2x64xf32> to vector<2x64xbf16>
    %c0_6 = arith.constant 0 : index
    %c0_7 = arith.constant 0 : index
    %9 = vector.load %arg4[%c0_6, %c0_7] : memref<64x32xbf16, #tpu.memory_space<vmem>>, vector<64x32xbf16>
    %cst_8 = arith.constant dense<0.000000e+00> : vector<2x32xf32>
    %10 = tpu.matmul %8, %9, %cst_8 {dimension_numbers = #tpu.dot_dimension_numbers<[1], [0], [0], [1], [0, 0, 1, 1], [], []>} : vector<2x64xbf16>, vector<64x32xbf16>, vector<2x32xf32> -> vector<2x32xf32>
    %c0_9 = arith.constant 0 : index
    %c0_10 = arith.constant 0 : index
    %11 = vector.load %arg5[%c0_9, %c0_10] : memref<1x32xf32, #tpu.memory_space<vmem>>, vector<1x32xf32>
    %12 = vector.broadcast %11 : vector<1x32xf32> to vector<2x32xf32>
    %13 = arith.addf %10, %12 : vector<2x32xf32>
    %cst_11 = arith.constant 0.000000e+00 : f32
    %14 = vector.broadcast %cst_11 : f32 to vector<2x32xf32>
    %15 = arith.maximumf %13, %14 : vector<2x32xf32>
    %16 = arith.truncf %15 : vector<2x32xf32> to vector<2x32xbf16>
    %c0_12 = arith.constant 0 : index
    %c0_13 = arith.constant 0 : index
    %17 = vector.load %arg6[%c0_12, %c0_13] : memref<32x200xbf16, #tpu.memory_space<vmem>>, vector<32x200xbf16>
    %cst_14 = arith.constant dense<0.000000e+00> : vector<2x200xf32>
    %18 = tpu.matmul %16, %17, %cst_14 {dimension_numbers = #tpu.dot_dimension_numbers<[1], [0], [0], [1], [0, 0, 1, 1], [], []>} : vector<2x32xbf16>, vector<32x200xbf16>, vector<2x200xf32> -> vector<2x200xf32>
    %c0_15 = arith.constant 0 : index
    %c0_16 = arith.constant 0 : index
    %19 = vector.load %arg7[%c0_15, %c0_16] : memref<1x200xf32, #tpu.memory_space<vmem>>, vector<1x200xf32>
    %20 = vector.broadcast %19 : vector<1x200xf32> to vector<2x200xf32>
    %21 = arith.addf %18, %20 : vector<2x200xf32>
    %22 = math.tanh %21 : vector<2x200xf32>
    %23 = arith.truncf %22 : vector<2x200xf32> to vector<2x200xbf16>
    %c0_17 = arith.constant 0 : index
    %c0_18 = arith.constant 0 : index
    %24 = vector.load %arg8[%c0_17, %c0_18] : memref<200x32xbf16, #tpu.memory_space<vmem>>, vector<200x32xbf16>
    %cst_19 = arith.constant dense<0.000000e+00> : vector<2x32xf32>
    %25 = tpu.matmul %23, %24, %cst_19 {dimension_numbers = #tpu.dot_dimension_numbers<[1], [0], [0], [1], [0, 0, 1, 1], [], []>} : vector<2x200xbf16>, vector<200x32xbf16>, vector<2x32xf32> -> vector<2x32xf32>
    %c0_20 = arith.constant 0 : index
    %c0_21 = arith.constant 0 : index
    %26 = vector.load %arg9[%c0_20, %c0_21] : memref<1x32xf32, #tpu.memory_space<vmem>>, vector<1x32xf32>
    %27 = vector.broadcast %26 : vector<1x32xf32> to vector<2x32xf32>
    %28 = arith.addf %25, %27 : vector<2x32xf32>
    %cst_22 = arith.constant 0.000000e+00 : f32
    %29 = vector.broadcast %cst_22 : f32 to vector<2x32xf32>
    %30 = arith.maximumf %28, %29 : vector<2x32xf32>
    %31 = arith.truncf %30 : vector<2x32xf32> to vector<2x32xbf16>
    %c0_23 = arith.constant 0 : index
    %c0_24 = arith.constant 0 : index
    %32 = vector.load %arg10[%c0_23, %c0_24] : memref<32x64xbf16, #tpu.memory_space<vmem>>, vector<32x64xbf16>
    %cst_25 = arith.constant dense<0.000000e+00> : vector<2x64xf32>
    %33 = tpu.matmul %31, %32, %cst_25 {dimension_numbers = #tpu.dot_dimension_numbers<[1], [0], [0], [1], [0, 0, 1, 1], [], []>} : vector<2x32xbf16>, vector<32x64xbf16>, vector<2x64xf32> -> vector<2x64xf32>
    %c0_26 = arith.constant 0 : index
    %c0_27 = arith.constant 0 : index
    %34 = vector.load %arg11[%c0_26, %c0_27] : memref<1x64xf32, #tpu.memory_space<vmem>>, vector<1x64xf32>
    %35 = vector.broadcast %34 : vector<1x64xf32> to vector<2x64xf32>
    %36 = arith.addf %33, %35 : vector<2x64xf32>
    %cst_28 = arith.constant 0.000000e+00 : f32
    %37 = vector.broadcast %cst_28 : f32 to vector<2x64xf32>
    %38 = arith.maximumf %36, %37 : vector<2x64xf32>
    %39 = arith.truncf %38 : vector<2x64xf32> to vector<2x64xbf16>
    %c0_29 = arith.constant 0 : index
    %c0_30 = arith.constant 0 : index
    %40 = vector.load %arg12[%c0_29, %c0_30] : memref<64x128xbf16, #tpu.memory_space<vmem>>, vector<64x128xbf16>
    %cst_31 = arith.constant dense<0.000000e+00> : vector<2x128xf32>
    %41 = tpu.matmul %39, %40, %cst_31 {dimension_numbers = #tpu.dot_dimension_numbers<[1], [0], [0], [1], [0, 0, 1, 1], [], []>} : vector<2x64xbf16>, vector<64x128xbf16>, vector<2x128xf32> -> vector<2x128xf32>
    %c0_32 = arith.constant 0 : index
    %c0_33 = arith.constant 0 : index
    %42 = vector.load %arg13[%c0_32, %c0_33] : memref<1x128xf32, #tpu.memory_space<vmem>>, vector<1x128xf32>
    %43 = vector.broadcast %42 : vector<1x128xf32> to vector<2x128xf32>
    %44 = arith.addf %41, %43 : vector<2x128xf32>
    %cst_34 = arith.constant 1.000000e+01 : f32
    %45 = vector.broadcast %cst_34 : f32 to vector<2x128xf32>
    %46 = arith.mulf %44, %45 : vector<2x128xf32>
    %c0_35 = arith.constant 0 : index
    %c0_36 = arith.constant 0 : index
    %47 = vector.load %arg14[%c0_35, %c0_36] : memref<2x128xf32, #tpu.memory_space<vmem>>, vector<2x128xf32>
    tpu.vector_store %arg14[%c0_35, %c0_36], %46 {strides = array<i32>} : memref<2x128xf32, #tpu.memory_space<vmem>>, vector<2x128xf32>,
    return
  }
  func.func @transform_0(%arg0: i32) -> (i32, i32) {
    %c0_i32 = arith.constant 0 : i32
    %c0_i32_0 = arith.constant 0 : i32
    return %arg0, %c0_i32 : i32, i32
  }
  func.func @transform_1(%arg0: i32) -> (i32, i32) {
    %c0_i32 = arith.constant 0 : i32
    %c0_i32_0 = arith.constant 0 : i32
    %c0_i32_1 = arith.constant 0 : i32
    return %c0_i32, %c0_i32_0 : i32, i32
  }
  func.func @transform_2(%arg0: i32) -> (i32, i32) {
    %c0_i32 = arith.constant 0 : i32
    %c0_i32_0 = arith.constant 0 : i32
    %c0_i32_1 = arith.constant 0 : i32
    return %c0_i32, %c0_i32_0 : i32, i32
  }
  func.func @transform_3(%arg0: i32) -> (i32, i32) {
    %c0_i32 = arith.constant 0 : i32
    %c0_i32_0 = arith.constant 0 : i32
    %c0_i32_1 = arith.constant 0 : i32
    return %c0_i32, %c0_i32_0 : i32, i32
  }
  func.func @transform_4(%arg0: i32) -> (i32, i32) {
    %c0_i32 = arith.constant 0 : i32
    %c0_i32_0 = arith.constant 0 : i32
    %c0_i32_1 = arith.constant 0 : i32
    return %c0_i32, %c0_i32_0 : i32, i32
  }
  func.func @transform_5(%arg0: i32) -> (i32, i32) {
    %c0_i32 = arith.constant 0 : i32
    %c0_i32_0 = arith.constant 0 : i32
    %c0_i32_1 = arith.constant 0 : i32
    return %c0_i32, %c0_i32_0 : i32, i32
  }
  func.func @transform_6(%arg0: i32) -> (i32, i32) {
    %c0_i32 = arith.constant 0 : i32
    %c0_i32_0 = arith.constant 0 : i32
    %c0_i32_1 = arith.constant 0 : i32
    return %c0_i32, %c0_i32_0 : i32, i32
  }
  func.func @transform_7(%arg0: i32) -> (i32, i32) {
    %c0_i32 = arith.constant 0 : i32
    %c0_i32_0 = arith.constant 0 : i32
    %c0_i32_1 = arith.constant 0 : i32
    return %c0_i32, %c0_i32_0 : i32, i32
  }
  func.func @transform_8(%arg0: i32) -> (i32, i32) {
    %c0_i32 = arith.constant 0 : i32
    %c0_i32_0 = arith.constant 0 : i32
    %c0_i32_1 = arith.constant 0 : i32
    return %c0_i32, %c0_i32_0 : i32, i32
  }
  func.func @transform_9(%arg0: i32) -> (i32, i32) {
    %c0_i32 = arith.constant 0 : i32
    %c0_i32_0 = arith.constant 0 : i32
    %c0_i32_1 = arith.constant 0 : i32
    return %c0_i32, %c0_i32_0 : i32, i32
  }
  func.func @transform_10(%arg0: i32) -> (i32, i32) {
    %c0_i32 = arith.constant 0 : i32
    %c0_i32_0 = arith.constant 0 : i32
    %c0_i32_1 = arith.constant 0 : i32
    return %c0_i32, %c0_i32_0 : i32, i32
  }
  func.func @transform_11(%arg0: i32) -> (i32, i32) {
    %c0_i32 = arith.constant 0 : i32
    %c0_i32_0 = arith.constant 0 : i32
    %c0_i32_1 = arith.constant 0 : i32
    return %c0_i32, %c0_i32_0 : i32, i32
  }
  func.func @transform_12(%arg0: i32) -> (i32, i32) {
    %c0_i32 = arith.constant 0 : i32
    %c0_i32_0 = arith.constant 0 : i32
    %c0_i32_1 = arith.constant 0 : i32
    return %c0_i32, %c0_i32_0 : i32, i32
  }
  func.func @transform_13(%arg0: i32) -> (i32, i32) {
    %c0_i32 = arith.constant 0 : i32
    %c0_i32_0 = arith.constant 0 : i32
    return %arg0, %c0_i32 : i32, i32
  }
}

</mosaic_0001>

<bundles_post_ra>
// kernel: autoencoder_forward.1
= control target key start
LH: loop header
LB: loop body
LE: loop exit
PB: predicated region body
PF: predicated region fallthrough
CT: control target
= control target key end

     0   :  { %v805_v0 = vmov 0.0   ;;  %vm806_vm0 = vmmov 0   ;;  %vm198_vm1 = vcmask 523264   ;;  %v807_v26 = vmov 0   ;;  %s1037_s1 = inlined_call_operand.vmem [shape: bf16[128,64], index: 1, kind: input, shape index: {}]   ;;  %s1038_s3 = inlined_call_operand.vmem [shape: bf16[64,32], index: 3, kind: input, shape index: {}]   ;;  %s1039_s0 = inlined_call_operand.vmem [shape: bf16[2,128], index: 0, kind: input, shape index: {}]   ;;  %s1040_s5 = inlined_call_operand.vmem [shape: bf16[32,200], index: 5, kind: input, shape index: {}]   ;;  %s1041_s2 = inlined_call_operand.vmem [shape: f32[1,64], index: 2, kind: input, shape index: {}]   ;;  %s1042_s7 = inlined_call_operand.vmem [shape: bf16[200,32], index: 7, kind: input, shape index: {}]   ;;  %s1043_s4 = inlined_call_operand.vmem [shape: f32[1,32], index: 4, kind: input, shape index: {}]   ;;  %s1044_s9 = inlined_call_operand.vmem [shape: bf16[32,64], index: 9, kind: input, shape index: {}]   ;;  %s1045_s6 = inlined_call_operand.vmem [shape: f32[1,200], index: 6, kind: input, shape index: {}]   ;;  %s1046_s11 = inlined_call_operand.vmem [shape: bf16[64,128], index: 11, kind: input, shape index: {}]   ;;  %s1047_s8 = inlined_call_operand.vmem [shape: f32[1,32], index: 8, kind: input, shape index: {}]   ;;  %s1048_s10 = inlined_call_operand.vmem [shape: f32[1,64], index: 10, kind: input, shape index: {}]   ;;  %s1049_s12 = inlined_call_operand.vmem [shape: f32[1,128], index: 12, kind: input, shape index: {}]   ;;  %s1050_s13 = inlined_call_operand.vmem [shape: f32[2,128], index: 13, kind: output, shape index: {}]  }
   0x1   :  { %709 = vmatprep.subr.bf16.mxu0 %v805_v0  ;;  %v764_v1 = vld [vmem:[%s1037_s1] sm:$0xff]   ;;  %725 = vmatprep.mubr.msk.bf16.mxu0 %vm806_vm0, %v805_v0  ;;  %v765_v2 = vld [vmem:[%s1037_s1 + $0x8] sm:$0xff]   ;;  %v766_v3 = vld [vmem:[%s1037_s1 + $0x10] sm:$0xff]   ;;  %vm280_vm2 = vcmask 261120   ;;  %vm440_vm3 = vcmask 1043456   ;;  %v250_v50 = vlaneseq  ;;  %vm436_vm4 = vcmask 588800  }
   0x2   :  { %729 = vmatprep.subr.bf16.mxu1 %v805_v0  ;;  %737 = vmatprep.mubr.msk.bf16.mxu1 %vm806_vm0, %v805_v0  ;;  %v772_v4 = vld [vmem:[%s1038_s3] sm:$0xff]   ;;  %v767_v5 = vld [vmem:[%s1037_s1 + $0x18] sm:$0xff]   ;;  %v773_v6 = vld [vmem:[%s1038_s3 + $0x8] sm:$0xff]  }
   0x3   :  { %710 = vmatpush3.bf16.msra.mxu0 %v764_v1  ;;  %730 = vmatpush3.bf16.msra.mxu1 %v772_v4  ;;  %v768_v7 = vld [vmem:[%s1037_s1 + $0x20] sm:$0xff]   ;;  %v769_v8 = vld [vmem:[%s1037_s1 + $0x28] sm:$0xff]   ;;  %v770_v9 = vld [vmem:[%s1037_s1 + $0x30] sm:$0xff]   ;;  %v251_v51 = vshrl.u32 %v250_v50, 7 }
   0x4   :  { %711 = vmatprep.subr.bf16.mxu0 %v805_v0  ;;  %731 = vmatprep.subr.bf16.mxu1 %v805_v0  ;;  %v771_v10 = vld [vmem:[%s1037_s1 + $0x38] sm:$0xff]   ;;  %v45_v11 = vld [vmem:[%s1039_s0] sm:$0x1]  ;;  %v774_v12 = vld [vmem:[%s1038_s3 + $0x10] sm:$0xff]  }
   0x5   :  { %v775_v13 = vld [vmem:[%s1038_s3 + $0x18] sm:$0xff]   ;;  %v776_v14 = vld [vmem:[%s1040_s5] ss:$8 sps:$4 sm:$0xff]   ;;  %v778_v15 = vld [vmem:[%s1040_s5 + $0x4] ss:$8 sps:$4 sm:$0xff]   ;;  %v252_v52 = vsub.s32 0, %v251_v51 }
   0x6   :  { %v642_v16 = vld [vmem:[%s1041_s2] ss:$0 sm:$0xff]  ;;  %v781_v24 = vld [vmem:[%s1040_s5 + $0x14] ss:$8 sps:$4 sm:$0xff]   ;;  %v779_v25 = vld [vmem:[%s1040_s5 + $0x10] ss:$8 sps:$4 sm:$0xff]  }
   0x7   :  { %712 = vmatpush3.bf16.msra.mxu0 %v765_v2  ;;  %732 = vmatpush3.bf16.msra.mxu1 %v773_v6  ;;  %v782_v27 = vld [vmem:[%s1042_s7] sm:$0xff]   ;;  %v783_v28 = vld [vmem:[%s1042_s7 + $0x8] sm:$0xff]   ;;  %v784_v29 = vld [vmem:[%s1042_s7 + $0x10] sm:$0xff]   ;;  %v256_v54 = vsub.s32 1, %v251_v51 }
   0x8   :  { %713 = vmatprep.subr.bf16.mxu0 %v805_v0  ;;  %733 = vmatprep.subr.bf16.mxu1 %v805_v0  ;;  %v785_v30 = vld [vmem:[%s1042_s7 + $0x18] sm:$0xff]   ;;  %v786_v31 = vld [vmem:[%s1042_s7 + $0x20] sm:$0xff]   ;;  %v787_v32 = vld [vmem:[%s1042_s7 + $0x28] sm:$0xff]  }
   0x9   :  { %v788_v33 = vld [vmem:[%s1042_s7 + $0x30] sm:$0xff]   ;;  %v789_v34 = vld [vmem:[%s1042_s7 + $0x38] sm:$0xff]   ;;  %v790_v35 = vld [vmem:[%s1042_s7 + $0x40] sm:$0xff]  }
   0xa   :  { %v651_v36 = vld [vmem:[%s1043_s4] ss:$0 sm:$0xff]  ;;  %v791_v44 = vld [vmem:[%s1042_s7 + $0x48] sm:$0xff]   ;;  %v792_v45 = vld [vmem:[%s1042_s7 + $0x50] sm:$0xff]  }
   0xb   :  { %714 = vmatpush3.bf16.msra.mxu0 %v766_v3  ;;  %734 = vmatpush3.bf16.msra.mxu1 %v774_v12  ;;  %v793_v46 = vld [vmem:[%s1042_s7 + $0x58] sm:$0xff]   ;;  %v794_v47 = vld [vmem:[%s1042_s7 + $0x60] ss:$0 sps:$4 sm:$0xff]   ;;  %v796_v4 = vld [vmem:[%s1044_s9 + $0x8] sm:$0xff]  }
   0xc   :  { %715 = vmatprep.subr.bf16.mxu0 %v805_v0  ;;  %735 = vmatprep.subr.bf16.mxu1 %v805_v0  ;;  %v442_v48 = vsel %vm440_vm3, %v794_v47, 0  ;;  %v795_v49 = vld [vmem:[%s1044_s9] sm:$0xff]  }
   0xd   :  { %v248_v53 = vld [vmem:[%s1045_s6] sm:$0x3] }
   0xe   :  { %v253_v55 = vrot.slane %v248_v53, %v252_v52  ;;  %v257_v56 = vrot.slane %v248_v53, %v256_v54  ;;  %v797_v12 = vld [vmem:[%s1046_s11] sm:$0xff]  }
   0xf   :  { %716 = vmatpush3.bf16.msra.mxu0 %v767_v5  ;;  %736 = vmatpush3.bf16.msra.mxu1 %v775_v13  ;;  %v662_v5 = vld [vmem:[%s1047_s8] ss:$0 sm:$0xff] }
  0x10   :  { %717 = vmatprep.subr.bf16.mxu0 %v805_v0  ;;  %444 = vmatprep.subr.bf16.mxu1 %v807_v26 }
  0x13   :  { %718 = vmatpush3.bf16.msra.mxu0 %v768_v7 }
  0x14   :  { %719 = vmatprep.subr.bf16.mxu0 %v805_v0 }
  0x17   :  { %720 = vmatpush3.bf16.msra.mxu0 %v769_v8 }
  0x18   :  { %721 = vmatprep.subr.bf16.mxu0 %v805_v0 }
  0x1b   :  { %722 = vmatpush3.bf16.msra.mxu0 %v770_v9 }
  0x1c   :  { %723 = vmatprep.subr.bf16.mxu0 %v805_v0 }
  0x1f   :  { %724 = vmatpush3.bf16.msra.mxu0 %v771_v10 }
  0x20   :  { %284 = vmatprep.subr.bf16.mxu0 %v778_v15  ;;  %v799_v15 = vld [vmem:[%s1046_s11 + $0x10] sm:$0xff]  }
  0x22   :  { %726 = vmatmul.mubr.bf16.vlgmr.msra.gmra.mrb[0].mxu0 %v45_v11 }
  0x23   :  { %285 = vmatpush1.bf16.msra.mxu0 %v776_v14  ;;  %316 = vmatprep.mubr.bf16.mxu0 %v807_v26  ;;  %v798_v14 = vld [vmem:[%s1046_s11 + $0x8] sm:$0xff]  }
  0x24   :  { %286 = vmatprep.subr.bf16.mxu0 %v781_v24 }
  0x27   :  { %287 = vmatpush1.bf16.msra.mxu0 %v779_v25 }
  0x28   :  { %741 = vmatprep.subr.bf16.mxu0 %v805_v0 }
  0xf5   :  { %v151_v17 = vpop.f32.mrb[0].mxu0 }
  0xf6   :  { %v152_v18 = vadd.f32 %v642_v16, %v151_v17  ;;  %v727_v19 = vpop.f32.mrb[1].mxu0  ;;  %v800_v16 = vld [vmem:[%s1046_s11 + $0x18] sm:$0xff]   ;;  %v677_v17 = vld [vmem:[%s1048_s10] ss:$0 sm:$0xff] }
  0xf7   :  { %v154_v20 = vpop.f32.mrb[2].mxu0 }
  0xf8   :  { %v157_v21 = vmax.f32 %v152_v18, 0.0  ;;  %v728_v22 = vpop.f32.mrb[3].mxu0 }
  0xfa   :  { %v158_v23 = vpack.c.bf16 %v157_v21, %v157_v21 }
  0xfc   :  { %738 = vmatmul.mubr.msk.bf16.vlgmr.msra.gmra.mrb[0].mxu1 %vm198_vm1, %v158_v23 }
  0xfd   :  { %445 = vmatpush1.bf16.msra.mxu1 %v782_v27 }
  0xfe   :  { %446 = vmatprep.subr.bf16.mxu1 %v807_v26 }
 0x101   :  { %447 = vmatpush1.bf16.msra.mxu1 %v783_v28 }
 0x102   :  { %448 = vmatprep.subr.bf16.mxu1 %v807_v26 }
 0x105   :  { %449 = vmatpush1.bf16.msra.mxu1 %v784_v29 }
 0x106   :  { %450 = vmatprep.subr.bf16.mxu1 %v807_v26 }
 0x109   :  { %451 = vmatpush1.bf16.msra.mxu1 %v785_v30 }
 0x10a   :  { %452 = vmatprep.subr.bf16.mxu1 %v807_v26 }
 0x10d   :  { %453 = vmatpush1.bf16.msra.mxu1 %v786_v31 }
 0x10e   :  { %454 = vmatprep.subr.bf16.mxu1 %v807_v26 }
 0x111   :  { %455 = vmatpush1.bf16.msra.mxu1 %v787_v32 }
 0x112   :  { %456 = vmatprep.subr.bf16.mxu1 %v807_v26 }
 0x115   :  { %457 = vmatpush1.bf16.msra.mxu1 %v788_v33 }
 0x116   :  { %458 = vmatprep.subr.bf16.mxu1 %v807_v26 }
 0x119   :  { %459 = vmatpush1.bf16.msra.mxu1 %v789_v34 }
 0x11a   :  { %460 = vmatprep.subr.bf16.mxu1 %v807_v26 }
 0x11d   :  { %461 = vmatpush1.bf16.msra.mxu1 %v790_v35 }
 0x11e   :  { %462 = vmatprep.subr.bf16.mxu1 %v807_v26 }
 0x121   :  { %463 = vmatpush1.bf16.msra.mxu1 %v791_v44 }
 0x122   :  { %464 = vmatprep.subr.bf16.mxu1 %v807_v26 }
 0x125   :  { %465 = vmatpush1.bf16.msra.mxu1 %v792_v45 }
 0x126   :  { %466 = vmatprep.subr.bf16.mxu1 %v807_v26 }
 0x129   :  { %467 = vmatpush1.bf16.msra.mxu1 %v793_v46 }
 0x12a   :  { %468 = vmatprep.subr.bf16.mxu1 %v807_v26 }
 0x12d   :  { %469 = vmatpush1.bf16.msra.mxu1 %v442_v48 }
 0x1cf   :  { %v236_v37 = vpop.f32.mrb[0].mxu1 }
 0x1d0   :  { %v237_v38 = vadd.f32 %v651_v36, %v236_v37  ;;  %v739_v39 = vpop.f32.mrb[1].mxu1 }
 0x1d1   :  { %v239_v40 = vpop.f32.mrb[2].mxu1 }
 0x1d2   :  { %v242_v41 = vmax.f32 %v237_v38, 0.0  ;;  %v740_v42 = vpop.f32.mrb[3].mxu1 }
 0x1d4   :  { %v243_v43 = vpack.c.bf16 %v242_v41, %v242_v41 }
 0x1d6   :  { %661 = vmatmul.mubr.msk.bf16.vlgmr.msra.gmra.mrb[4].mxu0 %vm280_vm2, %v243_v43 }
 0x1d7   :  { %745 = vmatprep.mubr.msk.bf16.mxu0 %vm806_vm0, %v805_v0  ;;  %742 = vmatpush3.bf16.msra.mxu0 %v795_v49 }
 0x1d8   :  { %743 = vmatprep.subr.bf16.mxu0 %v805_v0 }
 0x1db   :  { %744 = vmatpush3.bf16.msra.mxu0 %v796_v4 }
 0x1dc   :  { %749 = vmatprep.subr.bf16.mxu0 %v805_v0 }
 0x2a9   :  { %v318_v57 = vpop.f32.mrb[4].mxu0 }
 0x2aa   :  { %v319_v58 = vadd.f32 %v318_v57, %v253_v55  ;;  %v320_v59 = vpop.f32.mrb[5].mxu0 }
 0x2ab   :  { %v321_v60 = vadd.f32 %v320_v59, %v257_v56  ;;  %v322_v61 = vpop.f32.mrb[6].mxu0 }
 0x2ac   :  { %801 = vtanh.f32 %v319_v58  ;;  %v323_v62 = vpop.f32.mrb[7].mxu0 }
 0x2ad   :  { %803 = vtanh.f32 %v321_v60 }
 0x2b6   :  { %v802_v63 = vpop.eup %801 }
 0x2b7   :  { %v804_v1 = vpop.eup %803  ;;  %v327_v3 = vpack.c.bf16 %v802_v63, %v802_v63 }
 0x2b8   :  { %v328_v2 = vpack.c.bf16 %v804_v1, %v804_v1 }
 0x2ba   :  { %676 = vmatprep.mubr.msk.bf16.mxu1 %vm436_vm4, %v328_v2 }
 0x2bb   :  { %477 = vmatmul.mubr.bf16.vlgmr.msra.gmra.mrb[4].mxu1 %v327_v3 }
 0x38e   :  { %v478_v6 = vpop.f32.mrb[4].mxu1 }
 0x38f   :  { %v479_v7 = vadd.f32 %v662_v5, %v478_v6  ;;  %v480_v8 = vpop.f32.mrb[5].mxu1 }
 0x390   :  { %v481_v9 = vpop.f32.mrb[6].mxu1 }
 0x391   :  { %v484_v10 = vmax.f32 %v479_v7, 0.0  ;;  %v482_v11 = vpop.f32.mrb[7].mxu1 }
 0x393   :  { %v485_v13 = vpack.c.bf16 %v484_v10, %v484_v10 }
 0x395   :  { %746 = vmatmul.mubr.msk.bf16.vlgmr.msra.gmra.mrb[8].mxu0 %vm280_vm2, %v485_v13 }
 0x396   :  { %750 = vmatpush3.bf16.msra.mxu0 %v797_v12  ;;  %757 = vmatprep.mubr.msk.bf16.mxu0 %vm806_vm0, %v805_v0 }
 0x397   :  { %751 = vmatprep.subr.bf16.mxu0 %v805_v0 }
 0x39a   :  { %752 = vmatpush3.bf16.msra.mxu0 %v798_v14 }
 0x39b   :  { %753 = vmatprep.subr.bf16.mxu0 %v805_v0 }
 0x39e   :  { %754 = vmatpush3.bf16.msra.mxu0 %v799_v15 }
 0x39f   :  { %755 = vmatprep.subr.bf16.mxu0 %v805_v0  ;;  %v681_v0 = vld [vmem:[%s1049_s12] ss:$0 sm:$0xff] }
 0x3a2   :  { %756 = vmatpush3.bf16.msra.mxu0 %v800_v16 }
 0x468   :  { %v546_v18 = vpop.f32.mrb[8].mxu0 }
 0x469   :  { %v547_v19 = vadd.f32 %v677_v17, %v546_v18  ;;  %v747_v20 = vpop.f32.mrb[9].mxu0 }
 0x46a   :  { %v549_v21 = vpop.f32.mrb[10].mxu0 }
 0x46b   :  { %v552_v22 = vmax.f32 %v547_v19, 0.0  ;;  %v748_v23 = vpop.f32.mrb[11].mxu0 }
 0x46d   :  { %v553_v24 = vpack.c.bf16 %v552_v22, %v552_v22 }
 0x46f   :  { %758 = vmatmul.mubr.msk.bf16.vlgmr.msra.gmra.mrb[12].mxu0 %vm198_vm1, %v553_v24 }
 0x542   :  { %v630_v25 = vpop.f32.mrb[12].mxu0 }
 0x543   :  { %v631_v26 = vadd.f32 %v681_v0, %v630_v25  ;;  %v759_v27 = vpop.f32.mrb[13].mxu0 }
 0x544   :  { %v633_v28 = vpop.f32.mrb[14].mxu0 }
 0x545   :  { %v636_v29 = vmul.f32 10.0, %v631_v26  ;;  %v760_v30 = vpop.f32.mrb[15].mxu0 }
 0x547   :  { %637 = vst [vmem:[%s1050_s13] sm:$0x3] %v636_v29 }

</bundles_post_ra>
